<compile_context>
chip_gen: v7x
topology: tpu7x:2x2x1
jax: 0.10.0
libtpu: 0.0.40
codegen_flags: <defaults>
</compile_context>

<pallas_src>
import numpy as np

import jax
import jax.numpy as jnp
from jax.experimental import pallas as pl
from jax.experimental.pallas import tpu as pltpu


# ------------------------------------------------------------------ buffer init
def sinusoid_table(n_position, d_hid, dtype=jnp.float32):
    """Exact reproduction of PositionalEncoding._get_sinusoid_encoding_table.
    Pre-cast once at module init to the model dtype (avoids a per-call astype)."""
    eps = 1e-8
    pos = np.arange(n_position, dtype=np.float64)[:, None]
    j = np.arange(d_hid)
    denom = np.power(10000.0, 2 * (j // 2) / d_hid) + eps
    table = pos / denom[None, :]
    table[:, 0::2] = np.sin(table[:, 0::2])
    table[:, 1::2] = np.cos(table[:, 1::2])
    return jnp.asarray(table, dtype=dtype)                  # (n_position, d_hid)


# ------------------------------------------------------------------ tile sizing
_BUDGET_BYTES = 12 << 20   # live double-buffered blocks; fits every generation's
                           # scoped-VMEM default (v5e 16 MiB, v6e/v7x 32 MiB)
_SMALL_BYTES = 1 << 20     # below ~1 MiB/core, splitting the grid is pure overhead


def _pick_tiles(B, P, dsize):
    """Block sizes (tb, tp) for the dense (B, P, 128) layout.

    Per grid step, double-buffered, VMEM holds: x-in (tb,tp,128), pos (1,tp,128),
    out (tb,tp,128)  ->  2 * (2*tb + 1) * tp * 128 * dsize bytes.
    """
    total_bytes = B * P * 128 * dsize

    def max_tp(tb):
        return _BUDGET_BYTES // (2 * (2 * tb + 1) * 128 * dsize)

    tb = B
    while tb > 1 and max_tp(tb) < min(P, 8):      # need room for an (8,128) tile
        tb = (tb + 1) // 2
    tp = min(P, max(1, max_tp(tb)))
    if tp < P:
        tp = max(8, (tp // 8) * 8)                # sublane block dim must be 8-aligned

    # v7x megacore: only force >= 2 parallel grid steps when each core gets
    # > ~1 MiB of traffic; on v5e/v6e (single TC) this is a no-op either way.
    if total_bytes > 2 * _SMALL_BYTES and pl.cdiv(B, tb) * pl.cdiv(P, tp) < 2:
        if tb > 1:
            tb = pl.cdiv(B, 2)
        elif tp > 8:
            tp = max(8, (pl.cdiv(P, 2) // 8) * 8)
    return tb, tp


# ------------------------------------------------------------------ kernel
def _pos_add_kernel(x_ref, p_ref, o_ref):
    # Dense layout:    x_ref (tb, tp, 128), p_ref (1, tp, 128)
    # Fallback layout: x_ref (B, tn),       p_ref (1, tn)
    # Broadcast add over the leading (batch) dim; lane-dense unmasked stores.
    o_ref[...] = x_ref[...] + p_ref[...]


# ------------------------------------------------------------------ forward
def positional_encoding(x, pos_table):
    """x: (B, S, D); pos_table: (n_position, D), n_position >= S, same dtype as x.
    Returns x + pos_table[:S] broadcast over batch (eval-mode semantics)."""
    B, S, D = x.shape
    n_position, d_hid = pos_table.shape
    assert D == d_hid, (D, d_hid)
    assert S <= n_position, f"sequence length {S} exceeds n_position {n_position}"

    pos = pos_table[:S]
    if pos.dtype != x.dtype:
        # In production pre-cast at init; pos is tiny so this is a negligible fallback.
        pos = pos.astype(x.dtype)

    n = S * D
    dsize = x.dtype.itemsize

    if n % 128 == 0:
        # ------- dense (8,128)-tile layout: (B, P, 128), P = S*D/128 ---------
        P = n // 128
        x3 = x.reshape(B, P, 128)                 # metadata reshape
        pos3 = pos.reshape(1, P, 128)
        tb, tp = _pick_tiles(B, P, dsize)
        grid = (pl.cdiv(B, tb), pl.cdiv(P, tp))
        out = pl.pallas_call(
            _pos_add_kernel,
            out_shape=jax.ShapeDtypeStruct((B, P, 128), x.dtype),
            grid=grid,
            in_specs=[
                pl.BlockSpec((tb, tp, 128), lambda b, p: (b, p, 0)),
                pl.BlockSpec((1, tp, 128), lambda b, p: (0, p, 0)),
            ],
            out_specs=pl.BlockSpec((tb, tp, 128), lambda b, p: (b, p, 0)),
            compiler_params=pltpu.CompilerParams(
                dimension_semantics=("parallel", "parallel")),
        )(x3, pos3)
        return out.reshape(B, S, D)

    # ------- fallback: S*D not 128-aligned -> (B, S*D) rows, cdiv lane tiles --
    x2 = x.reshape(B, n)
    pos2 = pos.reshape(1, n)
    if n <= 128:
        tn = n                                    # full-extent lane dim (legal block)
    else:
        max_tn = _BUDGET_BYTES // (2 * (2 * B + 1) * dsize)
        tn = max(128, min(n // 128, max(1, max_tn // 128)) * 128)
    grid = (pl.cdiv(n, tn),)
    out = pl.pallas_call(
        _pos_add_kernel,
        out_shape=jax.ShapeDtypeStruct((B, n), x.dtype),
        grid=grid,
        in_specs=[
            pl.BlockSpec((B, tn), lambda i: (0, i)),
            pl.BlockSpec((1, tn), lambda i: (0, i)),
        ],
        out_specs=pl.BlockSpec((B, tn), lambda i: (0, i)),
        compiler_params=pltpu.CompilerParams(dimension_semantics=("parallel",)),
    )(x2, pos2)
    return out.reshape(B, S, D)


# ------------------------------------------------------------------ main
if __name__ == "__main__":
    # small shapes implied by the module: batch=2, seq=64, d_hid=32, n_position=200
    B, S, D = 2, 64, 32
    N_POSITION = 200

    key = jax.random.PRNGKey(0)
    x = jax.random.normal(key, (B, S, D), jnp.float32)
    pos_table = sinusoid_table(N_POSITION, D, dtype=x.dtype)   # built once at init

    out = positional_encoding(x, pos_table)
    out = jax.block_until_ready(out)

    # pure-JAX reference check (check_values equivalent: finite + exact semantics)
    ref = x + pos_table[:S][None, :, :]
    assert out.shape == (B, S, D), out.shape
    assert bool(jnp.all(jnp.isfinite(out)))
    assert bool(jnp.allclose(out, ref, atol=1e-6, rtol=1e-6))
    print("KERNEL_OK")
</pallas_src>

<mosaic_0001>
module attributes {stable_mosaic.version = 11 : i64} {
  func.func @_pos_add_kernel(%arg0: i32, %arg1: i32, %arg2: memref<2x16x128xf32, #tpu.memory_space<vmem>>, %arg3: memref<1x16x128xf32, #tpu.memory_space<vmem>>, %arg4: memref<2x16x128xf32, #tpu.memory_space<vmem>>) attributes {dimension_semantics = [#tpu.dimension_semantics<parallel>, #tpu.dimension_semantics<parallel>], iteration_bounds = array<i64: 1, 1>, scalar_prefetch = 0 : i64, scratch_operands = 0 : i64, tpu.core_type = #tpu.core_type<tc>, window_params = [{transform_indices = @transform_0, window_bounds = array<i64: 2, 16, 128>}, {transform_indices = @transform_1, window_bounds = array<i64: 1, 16, 128>}, {transform_indices = @transform_2, window_bounds = array<i64: 2, 16, 128>}]} {
    %c0 = arith.constant 0 : index
    %c0_0 = arith.constant 0 : index
    %c0_1 = arith.constant 0 : index
    %0 = vector.load %arg2[%c0, %c0_0, %c0_1] : memref<2x16x128xf32, #tpu.memory_space<vmem>>, vector<2x16x128xf32>
    %c0_2 = arith.constant 0 : index
    %c0_3 = arith.constant 0 : index
    %c0_4 = arith.constant 0 : index
    %1 = vector.load %arg3[%c0_2, %c0_3, %c0_4] : memref<1x16x128xf32, #tpu.memory_space<vmem>>, vector<1x16x128xf32>
    %2 = vector.broadcast %1 : vector<1x16x128xf32> to vector<2x16x128xf32>
    %3 = arith.addf %0, %2 : vector<2x16x128xf32>
    %c0_5 = arith.constant 0 : index
    %c0_6 = arith.constant 0 : index
    %c0_7 = arith.constant 0 : index
    %4 = vector.load %arg4[%c0_5, %c0_6, %c0_7] : memref<2x16x128xf32, #tpu.memory_space<vmem>>, vector<2x16x128xf32>
    tpu.vector_store %arg4[%c0_5, %c0_6, %c0_7], %3 {strides = array<i32>} : memref<2x16x128xf32, #tpu.memory_space<vmem>>, vector<2x16x128xf32>,
    return
  }
  func.func @transform_0(%arg0: i32, %arg1: i32) -> (i32, i32, i32) {
    %c0_i32 = arith.constant 0 : i32
    %c0_i32_0 = arith.constant 0 : i32
    return %arg0, %arg1, %c0_i32 : i32, i32, i32
  }
  func.func @transform_1(%arg0: i32, %arg1: i32) -> (i32, i32, i32) {
    %c0_i32 = arith.constant 0 : i32
    %c0_i32_0 = arith.constant 0 : i32
    %c0_i32_1 = arith.constant 0 : i32
    return %c0_i32, %arg1, %c0_i32_0 : i32, i32, i32
  }
  func.func @transform_2(%arg0: i32, %arg1: i32) -> (i32, i32, i32) {
    %c0_i32 = arith.constant 0 : i32
    %c0_i32_0 = arith.constant 0 : i32
    return %arg0, %arg1, %c0_i32 : i32, i32, i32
  }
}

</mosaic_0001>

<bundles_post_ra>
// kernel: tpu_custom_call.1
= control target key start
LH: loop header
LB: loop body
LE: loop exit
PB: predicated region body
PF: predicated region fallthrough
CT: control target
= control target key end

     0   :  { %7 = vsyncpa [#allocation3], 0  ;;  %s214_s0 = inlined_call_operand.hbm [shape: f32[2,16,128], index: 0, kind: input, shape index: {}]   ;;  %s215_s1 = inlined_call_operand.hbm [shape: f32[1,16,128], index: 1, kind: input, shape index: {}]   ;;  %s216_s2 = inlined_call_operand.hbm [shape: f32[2,16,128], index: 2, kind: output, shape index: {}]  }
   0x1   :  { %8 = vsyncpa [#allocation6], 0 }
   0x2   :  { %9 = vsyncpa [#allocation4], 0  ;;  %s149_s9 = smov [#allocation2]   ;;  %s77_s13 = scalar_lea.hbm %s214_s0, 512 }
   0x3   :  { %s15_s10 = sshll.u32 %s149_s9, 4  ;;  %p78_p0 = scmp.ne.s32.totalorder %s214_s0, %s77_s13  ;;  %s16_s10 = int_to_ptr.vmem [resolvable:$true] %s15_s10 }
   0x4   :  { %p81_p1 = scmp.lt.u32.totalorder %s77_s13, %s214_s0 }
   0x6   :  { %p83_p2 = pnand %p81_p1, %p78_p0 }
   0x8   :  { %86 = shalt.err (!%p83_p2)
}
   0x9   :  { %s87_s18 = scalar_lea.vmem %s16_s10, 512  ;;  %p92_p4 = scmp.lt.s32.totalorder %s16_s10, %s16_s10 }
   0xa   :  { %p88_p3 = scmp.ne.s32.totalorder %s16_s10, %s87_s18  ;;  %p93_p5 = scmp.lt.s32.totalorder %s87_s18, %s87_s18 }
   0xc   :  { %p94_p6 = por %p93_p5, %p92_p4 }
   0xe   :  { %p95_p7 = pnand %p94_p6, %p88_p3 }
  0x10   :  { %98 = shalt.err (!%p95_p7)
}
  0x11   :  { %s150_s19 = smov 128   ;;  %s151_s20 = smov 8  }
  0x12   :  { %21 = dma.hbm_to_vmem [thread:$0]  %s214_s0, 512, %s16_s10, [#allocation3], %s150_s19, %s150_s19, %s151_s20  }
  0x13   :  { %s152_s23 = smov [#allocation5]   ;;  %s99_s27 = scalar_lea.hbm %s215_s1, 256 }
  0x14   :  { %s27_s24 = sshll.u32 %s152_s23, 4  ;;  %p100_p8 = scmp.ne.s32.totalorder %s215_s1, %s99_s27  ;;  %s28_s24 = int_to_ptr.vmem [resolvable:$true] %s27_s24 }
  0x15   :  { %p103_p9 = scmp.lt.u32.totalorder %s99_s27, %s215_s1 }
  0x17   :  { %p105_p10 = pnand %p103_p9, %p100_p8 }
  0x19   :  { %108 = shalt.err (!%p105_p10)
}
  0x1a   :  { %s109_s4 = scalar_lea.vmem %s28_s24, 256  ;;  %p114_p12 = scmp.lt.s32.totalorder %s28_s24, %s28_s24 }
  0x1b   :  { %p110_p11 = scmp.ne.s32.totalorder %s28_s24, %s109_s4  ;;  %p115_p13 = scmp.lt.s32.totalorder %s109_s4, %s109_s4 }
  0x1d   :  { %p116_p0 = por %p115_p13, %p114_p12 }
  0x1f   :  { %p117_p1 = pnand %p116_p0, %p110_p11 }
  0x21   :  { %120 = shalt.err (!%p117_p1)
}
  0x22   :  { %33 = dma.hbm_to_vmem [thread:$0]  %s215_s1, 256, %s28_s24, [#allocation6], %s150_s19, %s150_s19, %s151_s20  }
  0x23   :  { %143 = dma.done.wait [#allocation3], 512  }
  0x24   :  { %144 = vsyncadd [#allocation3], 4294966784 }
  0x25   :  { %145 = dma.done.wait [#allocation6], 256  }
  0x26   :  { %146 = vsyncadd [#allocation6], 4294967040  ;;  %s153_s6 = smov [#allocation7]   ;;  %v40_v0 = vld [vmem:[#allocation2] sm:$0xff]  ;;  %v41_v2 = vld [vmem:[#allocation2 + $0x8] sm:$0xff] }
  0x27   :  { %s59_s7 = sshll.u32 %s153_s6, 4  ;;  %v44_v1 = vld [vmem:[#allocation5] sm:$0xff]  ;;  %v45_v4 = vld [vmem:[#allocation5 + $0x8] sm:$0xff]  ;;  %v42_v5 = vld [vmem:[#allocation2 + $0x10] sm:$0xff]  ;;  %s60_s7 = int_to_ptr.vmem [resolvable:$true] %s59_s7 }
  0x28   :  { %v46_v3 = vadd.f32 %v44_v1, %v40_v0  ;;  %v43_v6 = vld [vmem:[#allocation2 + $0x18] sm:$0xff]  ;;  %v47_v7 = vadd.f32 %v45_v4, %v41_v2  ;;  %v48_v8 = vadd.f32 %v44_v1, %v42_v5  ;;  %s121_s1 = scalar_lea.vmem %s60_s7, 512  ;;  %p126_p3 = scmp.lt.s32.totalorder %s60_s7, %s60_s7 }
  0x29   :  { %v49_v9 = vadd.f32 %v45_v4, %v43_v6  ;;  %p122_p2 = scmp.ne.s32.totalorder %s60_s7, %s121_s1  ;;  %p127_p4 = scmp.lt.s32.totalorder %s121_s1, %s121_s1 }
  0x2a   :  { %50 = vst [vmem:[#allocation7] sm:$0xff] %v46_v3  ;;  %51 = vst [vmem:[#allocation7 + $0x8] sm:$0xff] %v47_v7 }
  0x2b   :  { %52 = vst [vmem:[#allocation7 + $0x10] sm:$0xff] %v48_v8  ;;  %53 = vst [vmem:[#allocation7 + $0x18] sm:$0xff] %v49_v9  ;;  %p128_p5 = por %p127_p4, %p126_p3 }
  0x2d   :  { %p129_p6 = pnand %p128_p5, %p122_p2 }
  0x2f   :  { %132 = shalt.err (!%p129_p6)
}
  0x30   :  { %s133_s10 = scalar_lea.hbm %s216_s2, 512 }
  0x31   :  { %p134_p7 = scmp.ne.s32.totalorder %s216_s2, %s133_s10  ;;  %p137_p8 = scmp.lt.u32.totalorder %s133_s10, %s216_s2 }
  0x33   :  { %p139_p9 = pnand %p137_p8, %p134_p7 }
  0x35   :  { %142 = shalt.err (!%p139_p9)
}
  0x36   :  { %65 = dma.vmem_to_hbm [thread:$0]  %s60_s7, 512, %s216_s2, [#allocation4], %s150_s19, %s150_s19, %s151_s20  }
  0x37   :  { %147 = dma.done.wait [#allocation4], 512  }
  0x38   :  { %148 = vsyncadd [#allocation4], 4294966784 }
  0x39   :  { %69 = vsyncpa [#allocation3], 1 }
  0x3a   :  { %70 = vsyncpa [#allocation6], 1 }
  0x3b   :  { %71 = vsyncpa [#allocation4], 1 }

</bundles_post_ra>
